<compile_context>
chip_gen: v7x
topology: tpu7x:2x2x1
jax: 0.10.0
libtpu: 0.0.40
codegen_flags: <defaults>
</compile_context>

<pallas_src>
import functools

import jax
import jax.numpy as jnp
from jax.experimental import pallas as pl
from jax.experimental.pallas import tpu as pltpu

# ---------------------------------------------------------------------------
# Model configuration (small, consistent with the module's __init__)
# ---------------------------------------------------------------------------
DIM = 4            # data dimension
N_LAYERS = 2       # number of flow layers
HIDDEN = [32, 32]  # hidden dims of the residual MLP
BATCH = 2
SEQ = 8

LANE = 128
TN_CAP = 2048      # lanes per tile (review: 1024-4096; per-tile footprint ~1-2 MiB)


def _round_up(n, m):
    return ((n + m - 1) // m) * m


def _choose_tile(n):
    """Lane-tile width: as large as possible (fewer grid steps / less per-step
    overhead), but >= 2 tiles whenever N allows so the single 'parallel' grid
    axis can be split across v7x's two TensorCores (v5e/v6e have one TC)."""
    n128 = _round_up(max(n, 1), LANE)
    if n128 <= LANE:
        return LANE
    return min(TN_CAP, _round_up(n128 // 2, LANE))


# ---------------------------------------------------------------------------
# Pallas kernel: one grid step per N-tile; all flow layers fused inside.
# Layout: feature-major [F, TN] blocks, N on the lane axis.
# ---------------------------------------------------------------------------
def _make_flow_kernel(n_layers, d, h0, h1, cols):
    (_, c_w0x, c_w0t, c_b0, c_b1, c_w2, c_b2, c_wt) = cols

    def flow_kernel(x_ref, t_ref, w_ref, o_ref):
        x = x_ref[...]                              # [D, TN]  residual stream
        t = t_ref[...]                              # [1, TN]
        tn = x.shape[-1]

        # Layer-invariant broadcasts of t hoisted out of the loop
        # (JAX does not CSE broadcast_in_dim).
        t_h = jnp.broadcast_to(t, (h0, tn))         # for the w0t * t term
        t_d = jnp.broadcast_to(t, (d, tn))          # for the tanh time gate

        # Fused layer loop; the packed weights are a single VMEM-resident block.
        for l in range(n_layers):
            w0xT = w_ref[l, 0:h0, c_w0x:c_w0x + d]      # [H0, D]
            w0t  = w_ref[l, 0:h0, c_w0t:c_w0t + 1]      # [H0, 1]  (W0 row acting on t)
            b0   = w_ref[l, 0:h0, c_b0:c_b0 + 1]        # [H0, 1]
            w1T  = w_ref[l, 0:h1, 0:h0]                 # [H1, H0]
            b1   = w_ref[l, 0:h1, c_b1:c_b1 + 1]        # [H1, 1]
            w2T  = w_ref[l, 0:d,  c_w2:c_w2 + h1]       # [D, H1]
            b2   = w_ref[l, 0:d,  c_b2:c_b2 + 1]        # [D, 1]
            wt   = w_ref[l, 0:d,  c_wt:c_wt + 1]        # [D, 1]

            # --- Linear(dim+1 -> H0): concat([x, t]) folded into the affine term.
            # The K=D=4 contraction runs as D broadcast-FMAs on the VPU instead of a
            # tiny MXU matmul (<2% of the contraction width but full push/drain cost).
            h = w0t * t_h + b0                          # [H0, TN]
            for dd in range(d):
                h = h + w0xT[:, dd:dd + 1] * x[dd:dd + 1, :]
            h = jnp.maximum(h, 0.0)                     # ReLU

            # --- Linear(H0 -> H1): the only full-width contraction; keep on the MXU.
            h = jnp.dot(w1T, h, preferred_element_type=jnp.float32) + b1
            h = jnp.maximum(h, 0.0)                     # ReLU

            # --- Linear(H1 -> D): K=32 contraction, D=4 output rows; kept on the MXU.
            # TODO(synk): on v5e (sequential MRF) this M=4 matmul may be worth moving
            #             to 32 VPU FMAs; keep MXU on v6e/v7x.
            r = jnp.dot(w2T, h, preferred_element_type=jnp.float32) + b2    # [D, TN]

            # TimeTanh gate tanh(t * w_time) (EUP slot), residual update on the VPU.
            x = x + jnp.tanh(wt * t_d) * r

        o_ref[...] = x

    return flow_kernel


def resnet_flow_pallas_fm(xT, tT, w_pack, cols, tn=None):
    """Feature-major entry: xT [D, N_pad], tT [1, N_pad] (N on the lane axis,
    N_pad a multiple of the lane tile).  Returns [D, N_pad].  Large-N callers
    should build this slab upstream to avoid wrapper-side transpose traffic."""
    D, N_pad = xT.shape
    L, R, C = w_pack.shape
    h0 = cols[1]                 # c_w0x == H0
    h1 = cols[6] - cols[5]       # c_b2 - c_w2 == H1

    if tn is None:
        tn = _choose_tile(N_pad)
        if N_pad % tn:
            tn = LANE            # N_pad is always a multiple of 128
    assert N_pad % tn == 0

    return pl.pallas_call(
        _make_flow_kernel(L, D, h0, h1, cols),
        out_shape=jax.ShapeDtypeStruct((D, N_pad), jnp.float32),
        grid=(N_pad // tn,),
        in_specs=[
            pl.BlockSpec((D, tn), lambda i: (0, i)),        # x   (tiled over N)
            pl.BlockSpec((1, tn), lambda i: (0, i)),        # t   (tiled over N)
            pl.BlockSpec((L, R, C), lambda i: (0, 0, 0)),   # packed weights (~20 KB)
        ],
        out_specs=pl.BlockSpec((D, tn), lambda i: (0, i)),
        compiler_params=pltpu.CompilerParams(
            dimension_semantics=("parallel",)),             # independent lane tiles
    )(xT, tT, w_pack)


@functools.partial(jax.jit, static_argnums=(3,))
def resnet_flow_pallas(x, t, w_pack, cols):
    """x: [B, S, D] or [B, 1, D];  t: [B, S, 1].  Returns [B, S, D]."""
    B, S = t.shape[0], t.shape[1]
    D = x.shape[-1]
    if x.shape[-2] == 1:                    # repeat_interleave along the seq axis
        x = jnp.broadcast_to(x, (B, S, D))

    N = B * S
    TN = _choose_tile(N)
    N_pad = _round_up(N, TN)

    # Layout plumbing to the feature-major lane-dense slab: fused pad-of-transpose
    # under jit (no zero slab + scatter).
    xT = jnp.pad(x.reshape(N, D).astype(jnp.float32).T, ((0, 0), (0, N_pad - N)))
    tT = jnp.pad(t.reshape(N, 1).astype(jnp.float32).T, ((0, 0), (0, N_pad - N)))

    out = resnet_flow_pallas_fm(xT, tT, w_pack, cols, tn=TN)
    return out[:, :N].T.reshape(B, S, D)


# ---------------------------------------------------------------------------
# Deterministic parameter setup (plain JAX glue)
# ---------------------------------------------------------------------------
def _spectral_normalize(W, n_iters=5):
    """Divide W by its largest singular value estimated with power iteration
    (mirrors torch.nn.utils.spectral_norm at forward time, n_power_iterations=5)."""
    out_dim = W.shape[1]
    u = jnp.ones((out_dim,), jnp.float32) / jnp.sqrt(out_dim)
    v = None
    for _ in range(n_iters):
        v = W @ u
        v = v / (jnp.linalg.norm(v) + 1e-12)
        u = W.T @ v
        u = u / (jnp.linalg.norm(u) + 1e-12)
    sigma = v @ (W @ u)
    return W / sigma


def init_params(key, dim, hidden_dims, n_layers):
    """Build one packed weight array per layer: [n_layers, R, C] with
    R = max(H0, H1, D) rows and a static column layout (returned as `cols`)."""
    h0, h1 = hidden_dims
    R = max(h0, h1, dim)
    c_w1 = 0
    c_w0x = h0
    c_w0t = h0 + dim
    c_b0 = c_w0t + 1
    c_b1 = c_b0 + 1
    c_w2 = c_b1 + 1
    c_b2 = c_w2 + h1
    c_wt = c_b2 + 1
    C = c_wt + 1

    dims_in = [dim + 1, h0, h1]
    dims_out = [h0, h1, dim]

    packs = []
    for _ in range(n_layers):
        key, *ks = jax.random.split(key, 8)
        # torch Linear default init: U(-1/sqrt(in), 1/sqrt(in)) for W and b
        Ws, bs = [], []
        for i, (di, do) in enumerate(zip(dims_in, dims_out)):
            bound = 1.0 / jnp.sqrt(di)
            W = jax.random.uniform(ks[2 * i], (di, do), jnp.float32, -bound, bound)
            b = jax.random.uniform(ks[2 * i + 1], (do,), jnp.float32, -bound, bound)
            Ws.append(_spectral_normalize(W, n_iters=5))   # invertible=True -> spectral_norm
            bs.append(b)
        w_time = jax.random.normal(ks[6], (dim,), jnp.float32)  # TimeTanh scale (1, dim)

        p = jnp.zeros((R, C), jnp.float32)
        p = p.at[:h1, c_w1:c_w1 + h0].set(Ws[1].T)             # W1^T  [H1, H0]
        p = p.at[:h0, c_w0x:c_w0x + dim].set(Ws[0][:dim, :].T)  # W0x^T [H0, D]
        p = p.at[:h0, c_w0t].set(Ws[0][dim, :])                 # W0 row acting on t
        p = p.at[:h0, c_b0].set(bs[0])                          # b0
        p = p.at[:h1, c_b1].set(bs[1])                          # b1
        p = p.at[:dim, c_w2:c_w2 + h1].set(Ws[2].T)             # W2^T  [D, H1]
        p = p.at[:dim, c_b2].set(bs[2])                         # b2
        p = p.at[:dim, c_wt].set(w_time)                        # w_time
        packs.append(p)

    cols = (c_w1, c_w0x, c_w0t, c_b0, c_b1, c_w2, c_b2, c_wt)
    return jnp.stack(packs, axis=0), cols


# ---------------------------------------------------------------------------
# Pure-JAX reference (for correctness check)
# ---------------------------------------------------------------------------
def resnet_flow_ref(x, t, w_pack, cols):
    (_, c_w0x, c_w0t, c_b0, c_b1, c_w2, c_b2, c_wt) = cols
    h0 = c_w0x
    dim = c_w0t - c_w0x
    h1 = c_b2 - c_w2
    B, S = t.shape[0], t.shape[1]
    if x.shape[-2] == 1:
        x = jnp.broadcast_to(x, (B, S, dim))
    for l in range(w_pack.shape[0]):
        wp = w_pack[l]
        w0xT = wp[:h0, c_w0x:c_w0x + dim]
        w0t = wp[:h0, c_w0t]
        b0 = wp[:h0, c_b0]
        w1T = wp[:h1, :h0]
        b1 = wp[:h1, c_b1]
        w2T = wp[:dim, c_w2:c_w2 + h1]
        b2 = wp[:dim, c_b2]
        wt = wp[:dim, c_wt]
        h = jnp.maximum(x @ w0xT.T + t * w0t + b0, 0.0)
        h = jnp.maximum(h @ w1T.T + b1, 0.0)
        r = h @ w2T.T + b2
        x = x + jnp.tanh(t * wt) * r
    return x


if __name__ == "__main__":
    key = jax.random.PRNGKey(0)
    kp, kx, kt = jax.random.split(key, 3)

    w_pack, cols = init_params(kp, DIM, HIDDEN, N_LAYERS)

    x = jax.random.normal(kx, (BATCH, SEQ, DIM), jnp.float32)
    t = jax.random.uniform(kt, (BATCH, SEQ, 1), jnp.float32)

    out = resnet_flow_pallas(x, t, w_pack, cols)
    out = jax.block_until_ready(out)

    ref = resnet_flow_ref(x, t, w_pack, cols)
    assert out.shape == (BATCH, SEQ, DIM)
    assert jnp.allclose(out, ref, atol=2e-5, rtol=2e-5), "Pallas result mismatch vs JAX reference"

    print("KERNEL_OK")
</pallas_src>

<mosaic_0001>
module attributes {stable_mosaic.version = 11 : i64} {
  func.func @flow_kernel(%arg0: i32, %arg1: memref<4x128xf32, #tpu.memory_space<vmem>>, %arg2: memref<1x128xf32, #tpu.memory_space<vmem>>, %arg3: memref<2x32x73xf32, #tpu.memory_space<vmem>>, %arg4: memref<4x128xf32, #tpu.memory_space<vmem>>) attributes {dimension_semantics = [#tpu.dimension_semantics<parallel>], iteration_bounds = array<i64: 1>, scalar_prefetch = 0 : i64, scratch_operands = 0 : i64, tpu.core_type = #tpu.core_type<tc>, window_params = [{transform_indices = @transform_0, window_bounds = array<i64: 4, 128>}, {transform_indices = @transform_1, window_bounds = array<i64: 1, 128>}, {pipeline_mode = #tpu.pipeline_mode<synchronous>, transform_indices = @transform_2, window_bounds = array<i64: 2, 32, 73>}, {transform_indices = @transform_3, window_bounds = array<i64: 4, 128>}]} {
    %c0 = arith.constant 0 : index
    %c0_0 = arith.constant 0 : index
    %0 = vector.load %arg1[%c0, %c0_0] : memref<4x128xf32, #tpu.memory_space<vmem>>, vector<4x128xf32>
    %c0_1 = arith.constant 0 : index
    %c0_2 = arith.constant 0 : index
    %1 = vector.load %arg2[%c0_1, %c0_2] : memref<1x128xf32, #tpu.memory_space<vmem>>, vector<1x128xf32>
    %2 = vector.shape_cast %1 : vector<1x128xf32> to vector<1x128xf32>
    %3 = vector.broadcast %2 : vector<1x128xf32> to vector<32x128xf32>
    %4 = vector.shape_cast %1 : vector<1x128xf32> to vector<1x128xf32>
    %5 = vector.broadcast %4 : vector<1x128xf32> to vector<4x128xf32>
    %c0_3 = arith.constant 0 : index
    %c0_4 = arith.constant 0 : index
    %c32 = arith.constant 32 : index
    %6 = vector.load %arg3[%c0_3, %c0_4, %c32] : memref<2x32x73xf32, #tpu.memory_space<vmem>>, vector<1x32x4xf32>
    %7 = vector.shape_cast %6 : vector<1x32x4xf32> to vector<32x4xf32>
    %c0_5 = arith.constant 0 : index
    %c0_6 = arith.constant 0 : index
    %c36 = arith.constant 36 : index
    %8 = vector.load %arg3[%c0_5, %c0_6, %c36] : memref<2x32x73xf32, #tpu.memory_space<vmem>>, vector<1x32x1xf32>
    %9 = vector.shape_cast %8 : vector<1x32x1xf32> to vector<32x1xf32>
    %c0_7 = arith.constant 0 : index
    %c0_8 = arith.constant 0 : index
    %c37 = arith.constant 37 : index
    %10 = vector.load %arg3[%c0_7, %c0_8, %c37] : memref<2x32x73xf32, #tpu.memory_space<vmem>>, vector<1x32x1xf32>
    %11 = vector.shape_cast %10 : vector<1x32x1xf32> to vector<32x1xf32>
    %c0_9 = arith.constant 0 : index
    %c0_10 = arith.constant 0 : index
    %c0_11 = arith.constant 0 : index
    %12 = vector.load %arg3[%c0_9, %c0_10, %c0_11] : memref<2x32x73xf32, #tpu.memory_space<vmem>>, vector<1x32x32xf32>
    %13 = vector.shape_cast %12 : vector<1x32x32xf32> to vector<32x32xf32>
    %c0_12 = arith.constant 0 : index
    %c0_13 = arith.constant 0 : index
    %c38 = arith.constant 38 : index
    %14 = vector.load %arg3[%c0_12, %c0_13, %c38] : memref<2x32x73xf32, #tpu.memory_space<vmem>>, vector<1x32x1xf32>
    %15 = vector.shape_cast %14 : vector<1x32x1xf32> to vector<32x1xf32>
    %c0_14 = arith.constant 0 : index
    %c0_15 = arith.constant 0 : index
    %c39 = arith.constant 39 : index
    %16 = vector.load %arg3[%c0_14, %c0_15, %c39] : memref<2x32x73xf32, #tpu.memory_space<vmem>>, vector<1x4x32xf32>
    %17 = vector.shape_cast %16 : vector<1x4x32xf32> to vector<4x32xf32>
    %c0_16 = arith.constant 0 : index
    %c0_17 = arith.constant 0 : index
    %c71 = arith.constant 71 : index
    %18 = vector.load %arg3[%c0_16, %c0_17, %c71] : memref<2x32x73xf32, #tpu.memory_space<vmem>>, vector<1x4x1xf32>
    %19 = vector.shape_cast %18 : vector<1x4x1xf32> to vector<4x1xf32>
    %c0_18 = arith.constant 0 : index
    %c0_19 = arith.constant 0 : index
    %c72 = arith.constant 72 : index
    %20 = vector.load %arg3[%c0_18, %c0_19, %c72] : memref<2x32x73xf32, #tpu.memory_space<vmem>>, vector<1x4x1xf32>
    %21 = vector.shape_cast %20 : vector<1x4x1xf32> to vector<4x1xf32>
    %22 = vector.broadcast %9 : vector<32x1xf32> to vector<32x128xf32>
    %23 = arith.mulf %22, %3 : vector<32x128xf32>
    %24 = vector.broadcast %11 : vector<32x1xf32> to vector<32x128xf32>
    %25 = arith.addf %23, %24 : vector<32x128xf32>
    %26 = vector.extract_strided_slice %7 {offsets = [0, 0], sizes = [32, 1], strides = [1, 1]} : vector<32x4xf32> to vector<32x1xf32>
    %27 = vector.extract_strided_slice %0 {offsets = [0, 0], sizes = [1, 128], strides = [1, 1]} : vector<4x128xf32> to vector<1x128xf32>
    %28 = vector.broadcast %26 : vector<32x1xf32> to vector<32x128xf32>
    %29 = vector.broadcast %27 : vector<1x128xf32> to vector<32x128xf32>
    %30 = arith.mulf %28, %29 : vector<32x128xf32>
    %31 = arith.addf %25, %30 : vector<32x128xf32>
    %32 = vector.extract_strided_slice %7 {offsets = [0, 1], sizes = [32, 1], strides = [1, 1]} : vector<32x4xf32> to vector<32x1xf32>
    %33 = vector.extract_strided_slice %0 {offsets = [1, 0], sizes = [1, 128], strides = [1, 1]} : vector<4x128xf32> to vector<1x128xf32>
    %34 = vector.broadcast %32 : vector<32x1xf32> to vector<32x128xf32>
    %35 = vector.broadcast %33 : vector<1x128xf32> to vector<32x128xf32>
    %36 = arith.mulf %34, %35 : vector<32x128xf32>
    %37 = arith.addf %31, %36 : vector<32x128xf32>
    %38 = vector.extract_strided_slice %7 {offsets = [0, 2], sizes = [32, 1], strides = [1, 1]} : vector<32x4xf32> to vector<32x1xf32>
    %39 = vector.extract_strided_slice %0 {offsets = [2, 0], sizes = [1, 128], strides = [1, 1]} : vector<4x128xf32> to vector<1x128xf32>
    %40 = vector.broadcast %38 : vector<32x1xf32> to vector<32x128xf32>
    %41 = vector.broadcast %39 : vector<1x128xf32> to vector<32x128xf32>
    %42 = arith.mulf %40, %41 : vector<32x128xf32>
    %43 = arith.addf %37, %42 : vector<32x128xf32>
    %44 = vector.extract_strided_slice %7 {offsets = [0, 3], sizes = [32, 1], strides = [1, 1]} : vector<32x4xf32> to vector<32x1xf32>
    %45 = vector.extract_strided_slice %0 {offsets = [3, 0], sizes = [1, 128], strides = [1, 1]} : vector<4x128xf32> to vector<1x128xf32>
    %46 = vector.broadcast %44 : vector<32x1xf32> to vector<32x128xf32>
    %47 = vector.broadcast %45 : vector<1x128xf32> to vector<32x128xf32>
    %48 = arith.mulf %46, %47 : vector<32x128xf32>
    %49 = arith.addf %43, %48 : vector<32x128xf32>
    %cst = arith.constant 0.000000e+00 : f32
    %50 = vector.broadcast %cst : f32 to vector<32x128xf32>
    %51 = arith.maximumf %49, %50 : vector<32x128xf32>
    %cst_20 = arith.constant dense<0.000000e+00> : vector<32x128xf32>
    %52 = tpu.matmul %13, %51, %cst_20 {dimension_numbers = #tpu.dot_dimension_numbers<[1], [0], [0], [1], [0, 0, 1, 1], [], []>} : vector<32x32xf32>, vector<32x128xf32>, vector<32x128xf32> -> vector<32x128xf32>
    %53 = vector.broadcast %15 : vector<32x1xf32> to vector<32x128xf32>
    %54 = arith.addf %52, %53 : vector<32x128xf32>
    %cst_21 = arith.constant 0.000000e+00 : f32
    %55 = vector.broadcast %cst_21 : f32 to vector<32x128xf32>
    %56 = arith.maximumf %54, %55 : vector<32x128xf32>
    %cst_22 = arith.constant dense<0.000000e+00> : vector<4x128xf32>
    %57 = tpu.matmul %17, %56, %cst_22 {dimension_numbers = #tpu.dot_dimension_numbers<[1], [0], [0], [1], [0, 0, 1, 1], [], []>} : vector<4x32xf32>, vector<32x128xf32>, vector<4x128xf32> -> vector<4x128xf32>
    %58 = vector.broadcast %19 : vector<4x1xf32> to vector<4x128xf32>
    %59 = arith.addf %57, %58 : vector<4x128xf32>
    %60 = vector.broadcast %21 : vector<4x1xf32> to vector<4x128xf32>
    %61 = arith.mulf %60, %5 : vector<4x128xf32>
    %62 = math.tanh %61 : vector<4x128xf32>
    %63 = arith.mulf %62, %59 : vector<4x128xf32>
    %64 = arith.addf %0, %63 : vector<4x128xf32>
    %c1 = arith.constant 1 : index
    %c0_23 = arith.constant 0 : index
    %c32_24 = arith.constant 32 : index
    %65 = vector.load %arg3[%c1, %c0_23, %c32_24] : memref<2x32x73xf32, #tpu.memory_space<vmem>>, vector<1x32x4xf32>
    %66 = vector.shape_cast %65 : vector<1x32x4xf32> to vector<32x4xf32>
    %c1_25 = arith.constant 1 : index
    %c0_26 = arith.constant 0 : index
    %c36_27 = arith.constant 36 : index
    %67 = vector.load %arg3[%c1_25, %c0_26, %c36_27] : memref<2x32x73xf32, #tpu.memory_space<vmem>>, vector<1x32x1xf32>
    %68 = vector.shape_cast %67 : vector<1x32x1xf32> to vector<32x1xf32>
    %c1_28 = arith.constant 1 : index
    %c0_29 = arith.constant 0 : index
    %c37_30 = arith.constant 37 : index
    %69 = vector.load %arg3[%c1_28, %c0_29, %c37_30] : memref<2x32x73xf32, #tpu.memory_space<vmem>>, vector<1x32x1xf32>
    %70 = vector.shape_cast %69 : vector<1x32x1xf32> to vector<32x1xf32>
    %c1_31 = arith.constant 1 : index
    %c0_32 = arith.constant 0 : index
    %c0_33 = arith.constant 0 : index
    %71 = vector.load %arg3[%c1_31, %c0_32, %c0_33] : memref<2x32x73xf32, #tpu.memory_space<vmem>>, vector<1x32x32xf32>
    %72 = vector.shape_cast %71 : vector<1x32x32xf32> to vector<32x32xf32>
    %c1_34 = arith.constant 1 : index
    %c0_35 = arith.constant 0 : index
    %c38_36 = arith.constant 38 : index
    %73 = vector.load %arg3[%c1_34, %c0_35, %c38_36] : memref<2x32x73xf32, #tpu.memory_space<vmem>>, vector<1x32x1xf32>
    %74 = vector.shape_cast %73 : vector<1x32x1xf32> to vector<32x1xf32>
    %c1_37 = arith.constant 1 : index
    %c0_38 = arith.constant 0 : index
    %c39_39 = arith.constant 39 : index
    %75 = vector.load %arg3[%c1_37, %c0_38, %c39_39] : memref<2x32x73xf32, #tpu.memory_space<vmem>>, vector<1x4x32xf32>
    %76 = vector.shape_cast %75 : vector<1x4x32xf32> to vector<4x32xf32>
    %c1_40 = arith.constant 1 : index
    %c0_41 = arith.constant 0 : index
    %c71_42 = arith.constant 71 : index
    %77 = vector.load %arg3[%c1_40, %c0_41, %c71_42] : memref<2x32x73xf32, #tpu.memory_space<vmem>>, vector<1x4x1xf32>
    %78 = vector.shape_cast %77 : vector<1x4x1xf32> to vector<4x1xf32>
    %c1_43 = arith.constant 1 : index
    %c0_44 = arith.constant 0 : index
    %c72_45 = arith.constant 72 : index
    %79 = vector.load %arg3[%c1_43, %c0_44, %c72_45] : memref<2x32x73xf32, #tpu.memory_space<vmem>>, vector<1x4x1xf32>
    %80 = vector.shape_cast %79 : vector<1x4x1xf32> to vector<4x1xf32>
    %81 = vector.broadcast %68 : vector<32x1xf32> to vector<32x128xf32>
    %82 = arith.mulf %81, %3 : vector<32x128xf32>
    %83 = vector.broadcast %70 : vector<32x1xf32> to vector<32x128xf32>
    %84 = arith.addf %82, %83 : vector<32x128xf32>
    %85 = vector.extract_strided_slice %66 {offsets = [0, 0], sizes = [32, 1], strides = [1, 1]} : vector<32x4xf32> to vector<32x1xf32>
    %86 = vector.extract_strided_slice %64 {offsets = [0, 0], sizes = [1, 128], strides = [1, 1]} : vector<4x128xf32> to vector<1x128xf32>
    %87 = vector.broadcast %85 : vector<32x1xf32> to vector<32x128xf32>
    %88 = vector.broadcast %86 : vector<1x128xf32> to vector<32x128xf32>
    %89 = arith.mulf %87, %88 : vector<32x128xf32>
    %90 = arith.addf %84, %89 : vector<32x128xf32>
    %91 = vector.extract_strided_slice %66 {offsets = [0, 1], sizes = [32, 1], strides = [1, 1]} : vector<32x4xf32> to vector<32x1xf32>
    %92 = vector.extract_strided_slice %64 {offsets = [1, 0], sizes = [1, 128], strides = [1, 1]} : vector<4x128xf32> to vector<1x128xf32>
    %93 = vector.broadcast %91 : vector<32x1xf32> to vector<32x128xf32>
    %94 = vector.broadcast %92 : vector<1x128xf32> to vector<32x128xf32>
    %95 = arith.mulf %93, %94 : vector<32x128xf32>
    %96 = arith.addf %90, %95 : vector<32x128xf32>
    %97 = vector.extract_strided_slice %66 {offsets = [0, 2], sizes = [32, 1], strides = [1, 1]} : vector<32x4xf32> to vector<32x1xf32>
    %98 = vector.extract_strided_slice %64 {offsets = [2, 0], sizes = [1, 128], strides = [1, 1]} : vector<4x128xf32> to vector<1x128xf32>
    %99 = vector.broadcast %97 : vector<32x1xf32> to vector<32x128xf32>
    %100 = vector.broadcast %98 : vector<1x128xf32> to vector<32x128xf32>
    %101 = arith.mulf %99, %100 : vector<32x128xf32>
    %102 = arith.addf %96, %101 : vector<32x128xf32>
    %103 = vector.extract_strided_slice %66 {offsets = [0, 3], sizes = [32, 1], strides = [1, 1]} : vector<32x4xf32> to vector<32x1xf32>
    %104 = vector.extract_strided_slice %64 {offsets = [3, 0], sizes = [1, 128], strides = [1, 1]} : vector<4x128xf32> to vector<1x128xf32>
    %105 = vector.broadcast %103 : vector<32x1xf32> to vector<32x128xf32>
    %106 = vector.broadcast %104 : vector<1x128xf32> to vector<32x128xf32>
    %107 = arith.mulf %105, %106 : vector<32x128xf32>
    %108 = arith.addf %102, %107 : vector<32x128xf32>
    %cst_46 = arith.constant 0.000000e+00 : f32
    %109 = vector.broadcast %cst_46 : f32 to vector<32x128xf32>
    %110 = arith.maximumf %108, %109 : vector<32x128xf32>
    %cst_47 = arith.constant dense<0.000000e+00> : vector<32x128xf32>
    %111 = tpu.matmul %72, %110, %cst_47 {dimension_numbers = #tpu.dot_dimension_numbers<[1], [0], [0], [1], [0, 0, 1, 1], [], []>} : vector<32x32xf32>, vector<32x128xf32>, vector<32x128xf32> -> vector<32x128xf32>
    %112 = vector.broadcast %74 : vector<32x1xf32> to vector<32x128xf32>
    %113 = arith.addf %111, %112 : vector<32x128xf32>
    %cst_48 = arith.constant 0.000000e+00 : f32
    %114 = vector.broadcast %cst_48 : f32 to vector<32x128xf32>
    %115 = arith.maximumf %113, %114 : vector<32x128xf32>
    %cst_49 = arith.constant dense<0.000000e+00> : vector<4x128xf32>
    %116 = tpu.matmul %76, %115, %cst_49 {dimension_numbers = #tpu.dot_dimension_numbers<[1], [0], [0], [1], [0, 0, 1, 1], [], []>} : vector<4x32xf32>, vector<32x128xf32>, vector<4x128xf32> -> vector<4x128xf32>
    %117 = vector.broadcast %78 : vector<4x1xf32> to vector<4x128xf32>
    %118 = arith.addf %116, %117 : vector<4x128xf32>
    %119 = vector.broadcast %80 : vector<4x1xf32> to vector<4x128xf32>
    %120 = arith.mulf %119, %5 : vector<4x128xf32>
    %121 = math.tanh %120 : vector<4x128xf32>
    %122 = arith.mulf %121, %118 : vector<4x128xf32>
    %123 = arith.addf %64, %122 : vector<4x128xf32>
    %c0_50 = arith.constant 0 : index
    %c0_51 = arith.constant 0 : index
    %124 = vector.load %arg4[%c0_50, %c0_51] : memref<4x128xf32, #tpu.memory_space<vmem>>, vector<4x128xf32>
    tpu.vector_store %arg4[%c0_50, %c0_51], %123 {strides = array<i32>} : memref<4x128xf32, #tpu.memory_space<vmem>>, vector<4x128xf32>,
    return
  }
  func.func @transform_0(%arg0: i32) -> (i32, i32) {
    %c0_i32 = arith.constant 0 : i32
    %c0_i32_0 = arith.constant 0 : i32
    return %c0_i32, %arg0 : i32, i32
  }
  func.func @transform_1(%arg0: i32) -> (i32, i32) {
    %c0_i32 = arith.constant 0 : i32
    %c0_i32_0 = arith.constant 0 : i32
    return %c0_i32, %arg0 : i32, i32
  }
  func.func @transform_2(%arg0: i32) -> (i32, i32, i32) {
    %c0_i32 = arith.constant 0 : i32
    %c0_i32_0 = arith.constant 0 : i32
    %c0_i32_1 = arith.constant 0 : i32
    %c0_i32_2 = arith.constant 0 : i32
    return %c0_i32, %c0_i32_0, %c0_i32_1 : i32, i32, i32
  }
  func.func @transform_3(%arg0: i32) -> (i32, i32) {
    %c0_i32 = arith.constant 0 : i32
    %c0_i32_0 = arith.constant 0 : i32
    return %c0_i32, %arg0 : i32, i32
  }
}

</mosaic_0001>

<bundles_post_ra>
// kernel: resnet_flow_pallas.1
= control target key start
LH: loop header
LB: loop body
LE: loop exit
PB: predicated region body
PF: predicated region fallthrough
CT: control target
= control target key end

     0   :  { %v937_v0 = vmov 37   ;;  %v938_v1 = vmov 36   ;;  %v939_v5 = vmov 32   ;;  %v940_v7 = vmov 33   ;;  %s944_s22 = smov 89   ;;  %s1179_s2 = inlined_call_operand.vmem [shape: f32[2,32,73], index: 2, kind: input, shape index: {}]   ;;  %s1180_s0 = inlined_call_operand.vmem [shape: f32[4,128], index: 0, kind: input, shape index: {}]   ;;  %s1181_s1 = inlined_call_operand.vmem [shape: f32[1,128], index: 1, kind: input, shape index: {}]   ;;  %s1182_s3 = inlined_call_operand.vmem [shape: f32[4,128], index: 3, kind: output, shape index: {}]  }
   0x1   :  { %893 = vset.pattern.permute.xlu1 %v937_v0  ;;  %892 = vset.pattern.permute.xlu0 %v938_v1  ;;  %v22_v2 = vld [vmem:[%s1179_s2] sm:$0xff]  ;;  %v978_v3 = vld [vmem:[%s1179_s2 + $0x8] sm:$0xff]  ;;  %v985_v4 = vld [vmem:[%s1179_s2 + $0x18] sm:$0xff]  ;;  %v941_v8 = vmov 35   ;;  %v942_v9 = vmov 34   ;;  %vm203_vm0 = vcmask 261120   ;;  %v87_v21 = vlaneseq }
   0x2   :  { %52 = vperm.xlu1 %893, %v22_v2   ;;  %29 = vperm.xlu0 %892, %v22_v2   ;;  %v993_v6 = vld [vmem:[%s1179_s2 + $0x10] sm:$0xff]  ;;  %v943_v10 = vmov 38   ;;  %v1031_v11 = vld [vmem:[%s1179_s2] sm:$0xf]  ;;  %vm946_vm1 = vmmov 0  }
   0x3   :  { %809 = vmatprep.mubr.msk.f32.mxu0 %vm203_vm0, %v22_v2  ;;  %v1035_v24 = vshrl.u32 %v87_v21, 7  ;;  %v1041_v27 = vld [vmem:[%s1180_s0] sm:$0xf] }
   0x4   :  { %v1050_v31 = vld [vmem:[%s1181_s1] ss:$0 sm:$0xff] }
   0x5   :  { %v89_v25 = vsub.s32 0, %v1035_v24  ;;  %v117_v30 = vsub.s32 1, %v1035_v24  ;;  %v145_v35 = vsub.s32 2, %v1035_v24  ;;  %v173_v39 = vsub.s32 3, %v1035_v24 }
   0x6   :  { %56 = vperm.xlu1 %893, %v978_v3   ;;  %34 = vperm.xlu0 %892, %v978_v3  }
   0x7   :  { %v90_v29 = vrot.slane %v1041_v27, %v89_v25  ;;  %v118_v38 = vrot.slane %v1041_v27, %v117_v30  ;;  %v146_v45 = vrot.slane %v1041_v27, %v145_v35  ;;  %v174_v49 = vrot.slane %v1041_v27, %v173_v39 }
   0xa   :  { %894 = vset.pattern.permute.xlu1 %v939_v5  ;;  %44 = vperm.xlu0 %892, %v985_v4  }
   0xb   :  { %76 = vperm.xlu1 %894, %v978_v3  }
   0xe   :  { %897 = vset.pattern.permute.xlu0 %v937_v0 }
   0xf   :  { %895 = vset.pattern.permute.xlu1 %v938_v1  ;;  %60 = vperm.xlu0 %897, %v993_v6  }
  0x10   :  { %39 = vperm.xlu1 %895, %v993_v6  }
  0x13   :  { %898 = vset.pattern.permute.xlu0 %v939_v5 }
  0x14   :  { %896 = vset.pattern.permute.xlu1 %v940_v7  ;;  %72 = vperm.xlu0 %898, %v22_v2  }
  0x15   :  { %100 = vperm.xlu1 %896, %v22_v2  }
  0x18   :  { %84 = vperm.xlu0 %898, %v985_v4  }
  0x19   :  { %104 = vperm.xlu1 %896, %v978_v3  }
  0x1c   :  { %902 = vset.pattern.permute.xlu0 %v940_v7 }
  0x1d   :  { %899 = vset.pattern.permute.xlu1 %v937_v0  ;;  %108 = vperm.xlu0 %902, %v993_v6  }
  0x1e   :  { %64 = vperm.xlu1 %899, %v985_v4  }
  0x21   :  { %905 = vset.pattern.permute.xlu0 %v941_v8 }
  0x22   :  { %900 = vset.pattern.permute.xlu1 %v939_v5  ;;  %160 = vperm.xlu0 %905, %v978_v3  }
  0x23   :  { %80 = vperm.xlu1 %900, %v993_v6  }
  0x26   :  { %164 = vperm.xlu0 %905, %v993_v6  }
  0x27   :  { %901 = vset.pattern.permute.xlu1 %v942_v9 }
  0x28   :  { %128 = vperm.xlu1 %901, %v22_v2  }
  0x2a   :  { %908 = vset.pattern.permute.xlu0 %v943_v10 }
  0x2b   :  { %188 = vperm.xlu0 %908, %v22_v2  }
  0x2c   :  { %132 = vperm.xlu1 %901, %v978_v3  }
  0x2f   :  { %200 = vperm.xlu0 %908, %v985_v4  }
  0x30   :  { %903 = vset.pattern.permute.xlu1 %v940_v7 }
  0x31   :  { %112 = vperm.xlu1 %903, %v985_v4  }
  0x35   :  { %904 = vset.pattern.permute.xlu1 %v941_v8 }
  0x36   :  { %156 = vperm.xlu1 %904, %v22_v2  }
  0x3a   :  { %906 = vset.pattern.permute.xlu1 %v942_v9 }
  0x3b   :  { %136 = vperm.xlu1 %906, %v993_v6  }
  0x3f   :  { %140 = vperm.xlu1 %906, %v985_v4  }
  0x43   :  { %907 = vset.pattern.permute.xlu1 %v941_v8 }
  0x44   :  { %168 = vperm.xlu1 %907, %v985_v4  }
  0x48   :  { %909 = vset.pattern.permute.xlu1 %v943_v10 }
  0x49   :  { %192 = vperm.xlu1 %909, %v978_v3  }
  0x4d   :  { %196 = vperm.xlu1 %909, %v993_v6  }
  0x51   :  { %306 = vrot.lane.b32.xlu1 %v1031_v11, %s944_s22 }
  0x81   :  { %v53_v12 = vpop.permute.xlu1 %52  ;;  %v30_v15 = vpop.permute.xlu0 %29 }
  0x82   :  { %v47_v36 = vmul.f32 %v1050_v31, %v30_v15 }
  0x84   :  { %v67_v46 = vadd.f32 %v53_v12, %v47_v36 }
  0x85   :  { %v57_v13 = vpop.permute.xlu1 %56  ;;  %v35_v17 = vpop.permute.xlu0 %34 }
  0x86   :  { %v48_v34 = vmul.f32 %v1050_v31, %v35_v17 }
  0x88   :  { %v68_v42 = vadd.f32 %v57_v13, %v48_v34 }
  0x89   :  { %v45_v19 = vpop.permute.xlu0 %44 }
  0x8a   :  { %v77_v14 = vpop.permute.xlu1 %76  ;;  %v50_v12 = vmul.f32 %v1050_v31, %v45_v19 }
  0x8b   :  { %v92_v37 = vmul.f32 %v90_v29, %v77_v14 }
  0x8d   :  { %v96_v47 = vadd.f32 %v92_v37, %v68_v42 }
  0x8e   :  { %v61_v22 = vpop.permute.xlu0 %60 }
  0x8f   :  { %v40_v16 = vpop.permute.xlu1 %39 }
  0x90   :  { %v49_v58 = vmul.f32 %v1050_v31, %v40_v16 }
  0x92   :  { %v69_v13 = vadd.f32 %v61_v22, %v49_v58 }
  0x93   :  { %v73_v28 = vpop.permute.xlu0 %72 }
  0x94   :  { %v101_v18 = vpop.permute.xlu1 %100  ;;  %v91_v43 = vmul.f32 %v90_v29, %v73_v28 }
  0x95   :  { %v119_v52 = vmul.f32 %v118_v38, %v101_v18 }
  0x96   :  { %v95_v51 = vadd.f32 %v91_v43, %v67_v46 }
  0x97   :  { %v85_v32 = vpop.permute.xlu0 %84 }
  0x98   :  { %v105_v20 = vpop.permute.xlu1 %104  ;;  %v123_v59 = vadd.f32 %v119_v52, %v95_v51  ;;  %v949_v51 = vmov 72  }
  0x99   :  { %v120_v44 = vmul.f32 %v118_v38, %v105_v20  ;;  %910 = vset.pattern.permute.xlu0 %v949_v51 }
  0x9a   :  { %381 = vperm.xlu0 %910, %v1031_v11  }
  0x9b   :  { %v124_v53 = vadd.f32 %v120_v44, %v96_v47 }
  0x9c   :  { %v109_v40 = vpop.permute.xlu0 %108 }
  0x9d   :  { %v65_v23 = vpop.permute.xlu1 %64  ;;  %v121_v17 = vmul.f32 %v118_v38, %v109_v40 }
  0x9e   :  { %v70_v28 = vadd.f32 %v65_v23, %v50_v12  ;;  %913 = vset.pattern.permute.xlu0 %v938_v1 }
  0xa1   :  { %v161_v50 = vpop.permute.xlu0 %160 }
  0xa2   :  { %v81_v26 = vpop.permute.xlu1 %80  ;;  %v176_v57 = vmul.f32 %v174_v49, %v161_v50 }
  0xa3   :  { %v93_v61 = vmul.f32 %v90_v29, %v81_v26 }
  0xa5   :  { %v97_v15 = vadd.f32 %v93_v61, %v69_v13  ;;  %v165_v16 = vpop.permute.xlu0 %164 }
  0xa6   :  { %v177_v19 = vmul.f32 %v174_v49, %v165_v16 }
  0xa7   :  { %v129_v33 = vpop.permute.xlu1 %128  ;;  %v125_v37 = vadd.f32 %v121_v17, %v97_v15 }
  0xa8   :  { %v147_v55 = vmul.f32 %v146_v45, %v129_v33  ;;  %v94_v33 = vmul.f32 %v90_v29, %v85_v32 }
  0xaa   :  { %v151_v62 = vadd.f32 %v147_v55, %v123_v59  ;;  %v98_v42 = vadd.f32 %v94_v33, %v70_v28 }
  0xab   :  { %v133_v41 = vpop.permute.xlu1 %132 }
  0xac   :  { %v148_v48 = vmul.f32 %v146_v45, %v133_v41 }
  0xae   :  { %v152_v56 = vadd.f32 %v148_v48, %v124_v53 }
  0xb0   :  { %v113_v54 = vpop.permute.xlu1 %112  ;;  %v180_v63 = vadd.f32 %v176_v57, %v152_v56 }
  0xb1   :  { %v122_v41 = vmul.f32 %v118_v38, %v113_v54  ;;  %v945_v38 = vmov 0.0|0.0  }
  0xb2   :  { %v184_v18 = vmax.f32 %v180_v63, 0.0  ;;  %859 = vmatprep.subr.bf16.mxu1 %v945_v38 }
  0xb3   :  { %v126_v44 = vadd.f32 %v122_v41, %v98_v42 }
  0xb5   :  { %v157_v60 = vpop.permute.xlu1 %156 }
  0xb6   :  { %v175_v2 = vmul.f32 %v174_v49, %v157_v60 }
  0xb8   :  { %v179_v14 = vadd.f32 %v175_v2, %v151_v62  ;;  %v769_v2 = vld [vmem:[%s1179_s2 + $0x20] sm:$0xf] }
  0xba   :  { %v183_v20 = vmax.f32 %v179_v14, 0.0  ;;  %v137_v21 = vpop.permute.xlu1 %136 }
  0xbb   :  { %v149_v34 = vmul.f32 %v146_v45, %v137_v21 }
  0xbc   :  { %v851_v36 = vpack.c.bf16 %v184_v18, %v183_v20 }
  0xbd   :  { %v153_v43 = vadd.f32 %v149_v34, %v125_v37 }
  0xbe   :  { %v141_v26 = vpop.permute.xlu1 %140  ;;  %852 = vmatprep.subr.bf16.mxu0 %v851_v36 }
  0xbf   :  { %854 = vmatpush3.bf16.msra.mxu0 %v851_v36  ;;  %v150_v22 = vmul.f32 %v146_v45, %v141_v26  ;;  %v181_v40 = vadd.f32 %v177_v19, %v153_v43  ;;  %v947_v45 = vmov 0.0  }
  0xc0   :  { %823 = vmatprep.mubr.msk.f32.mxu1 %vm946_vm1, %v947_v45 }
  0xc1   :  { %v154_v47 = vadd.f32 %v150_v22, %v126_v44  ;;  %v185_v23 = vmax.f32 %v181_v40, 0.0 }
  0xc3   :  { %v169_v46 = vpop.permute.xlu1 %168 }
  0xc4   :  { %v178_v48 = vmul.f32 %v174_v49, %v169_v46  ;;  %v948_v49 = vmov 71  }
  0xc5   :  { %911 = vset.pattern.permute.xlu1 %v948_v49 }
  0xc6   :  { %v182_v50 = vadd.f32 %v178_v48, %v154_v47  ;;  %303 = vperm.xlu1 %911, %v1031_v11   ;;  %v1100_v11 = vld [vmem:[%s1179_s2 + $0x30] sm:$0xff] }
  0xc8   :  { %v186_v29 = vmax.f32 %v182_v50, 0.0 }
  0xca   :  { %v855_v32 = vpack.c.bf16 %v186_v29, %v185_v23  ;;  %912 = vset.pattern.permute.xlu1 %v938_v1 }
  0xcc   :  { %856 = vmatprep.subr.bf16.mxu0 %v855_v32 }
  0xcd   :  { %858 = vmatpush3.bf16.msra.mxu0 %v855_v32 }
  0xd0   :  { %810 = vmatmul.mubr.msk.f32.vlgmr.msra.gmra.mrb[0].mxu0 %vm203_vm0, %v978_v3  ;;  %v765_v3 = vld [vmem:[%s1179_s2 + $0x20] sm:$0xff] }
  0xd1   :  { %812 = vmatprep.mubr.msk.f32.mxu0 %vm203_vm0, %v993_v6  ;;  %396 = vperm.xlu1 %912, %v765_v3   ;;  %v1093_v6 = vld [vmem:[%s1179_s2 + $0x38] sm:$0xff] }
  0xd4   :  { %813 = vmatmul.mubr.msk.f32.gmra.mrb[2].mxu0 %vm203_vm0, %v985_v4  ;;  %v1086_v4 = vld [vmem:[%s1179_s2 + $0x28] sm:$0xff] }
  0xd5   :  { %834 = vmatprep.mubr.msk.f32.mxu0 %vm203_vm0, %v765_v3  ;;  %401 = vperm.xlu0 %913, %v1086_v4  }
  0xd6   :  { %914 = vset.pattern.permute.xlu1 %v937_v0 }
  0xd7   :  { %419 = vperm.xlu1 %914, %v765_v3  }
  0xd9   :  { %411 = vperm.xlu0 %913, %v1093_v6  }
  0xdb   :  { %423 = vperm.xlu1 %914, %v1086_v4  }
  0xdd   :  { %918 = vset.pattern.permute.xlu0 %v937_v0 }
  0xde   :  { %427 = vperm.xlu0 %918, %v1100_v11  }
  0xdf   :  { %915 = vset.pattern.permute.xlu1 %v939_v5 }
  0xe0   :  { %443 = vperm.xlu1 %915, %v1086_v4  }
  0xe2   :  { %919 = vset.pattern.permute.xlu0 %v939_v5 }
  0xe3   :  { %439 = vperm.xlu0 %919, %v765_v3  }
  0xe4   :  { %916 = vset.pattern.permute.xlu1 %v938_v1  ;;  %v193_v1 = vpop.permute.xlu1 %192 }
  0xe5   :  { %406 = vperm.xlu1 %916, %v1100_v11  }
  0xe7   :  { %451 = vperm.xlu0 %919, %v1093_v6  }
  0xe9   :  { %917 = vset.pattern.permute.xlu1 %v940_v7 }
  0xea   :  { %467 = vperm.xlu1 %917, %v765_v3  }
  0xeb   :  { %923 = vset.pattern.permute.xlu0 %v940_v7 }
  0xec   :  { %475 = vperm.xlu0 %923, %v1100_v11  }
  0xee   :  { %471 = vperm.xlu1 %917, %v1086_v4  }
  0xf0   :  { %926 = vset.pattern.permute.xlu0 %v941_v8 }
  0xf1   :  { %527 = vperm.xlu0 %926, %v1086_v4  }
  0xf2   :  { %920 = vset.pattern.permute.xlu1 %v937_v0  ;;  %v189_v0 = vpop.permute.xlu0 %188 }
  0xf3   :  { %431 = vperm.xlu1 %920, %v1093_v6  }
  0xf5   :  { %531 = vperm.xlu0 %926, %v1100_v11  }
  0xf6   :  { %v201_v54 = vpop.permute.xlu0 %200 }
  0xf7   :  { %921 = vset.pattern.permute.xlu1 %v939_v5 }
  0xf8   :  { %447 = vperm.xlu1 %921, %v1100_v11  }
  0xf9   :  { %929 = vset.pattern.permute.xlu0 %v943_v10 }
  0xfa   :  { %555 = vperm.xlu0 %929, %v765_v3  }
  0xfc   :  { %922 = vset.pattern.permute.xlu1 %v942_v9 }
  0xfd   :  { %495 = vperm.xlu1 %922, %v765_v3  }
  0xfe   :  { %567 = vperm.xlu0 %929, %v1093_v6  }
 0x101   :  { %499 = vperm.xlu1 %922, %v1086_v4  }
 0x102   :  { %931 = vset.pattern.permute.xlu0 %v949_v51 }
 0x103   :  { %747 = vperm.xlu0 %931, %v769_v2  }
 0x105   :  { %924 = vset.pattern.permute.xlu1 %v940_v7 }
 0x106   :  { %479 = vperm.xlu1 %924, %v1093_v6  }
 0x10a   :  { %925 = vset.pattern.permute.xlu1 %v941_v8 }
 0x10b   :  { %523 = vperm.xlu1 %925, %v765_v3  }
 0x10f   :  { %927 = vset.pattern.permute.xlu1 %v942_v9 }
 0x110   :  { %503 = vperm.xlu1 %927, %v1100_v11  }
 0x114   :  { %507 = vperm.xlu1 %927, %v1093_v6  }
 0x118   :  { %928 = vset.pattern.permute.xlu1 %v941_v8  ;;  %v197_v8 = vpop.permute.xlu1 %196 }
 0x119   :  { %535 = vperm.xlu1 %928, %v1093_v6   ;;  %v382_v33 = vpop.permute.xlu0 %381 }
 0x11a   :  { %v384_v42 = vmul.f32 %v1050_v31, %v382_v33 }
 0x11c   :  { %v307_v63 = vpop.permute.xlu1 %306  ;;  %933 = vtanh.f32 %v384_v42 }
 0x11d   :  { %930 = vset.pattern.permute.xlu1 %v943_v10 }
 0x11e   :  { %559 = vperm.xlu1 %930, %v1086_v4  }
 0x122   :  { %563 = vperm.xlu1 %930, %v1100_v11  }
 0x126   :  { %932 = vset.pattern.permute.xlu1 %v948_v49  ;;  %v934_v50 = vpop.eup %933 }
 0x127   :  { %672 = vrot.lane.b32.xlu1 %v769_v2, %s944_s22 }
 0x12b   :  { %669 = vperm.xlu1 %932, %v769_v2  }
 0x145   :  { %v304_v12 = vpop.permute.xlu1 %303 }
 0x150   :  { %v397_v13 = vpop.permute.xlu1 %396 }
 0x154   :  { %v402_v36 = vpop.permute.xlu0 %401 }
 0x155   :  { %v415_v32 = vmul.f32 %v1050_v31, %v402_v36 }
 0x156   :  { %v420_v14 = vpop.permute.xlu1 %419 }
 0x158   :  { %v412_v37 = vpop.permute.xlu0 %411 }
 0x15a   :  { %v424_v15 = vpop.permute.xlu1 %423 }
 0x15d   :  { %v428_v26 = vpop.permute.xlu0 %427 }
 0x15f   :  { %v444_v17 = vpop.permute.xlu1 %443 }
 0x162   :  { %v440_v19 = vpop.permute.xlu0 %439 }
 0x164   :  { %v407_v18 = vpop.permute.xlu1 %406 }
 0x165   :  { %v416_v51 = vmul.f32 %v1050_v31, %v407_v18 }
 0x166   :  { %v452_v44 = vpop.permute.xlu0 %451 }
 0x169   :  { %v468_v20 = vpop.permute.xlu1 %467 }
 0x16b   :  { %v476_v23 = vpop.permute.xlu0 %475 }
 0x16d   :  { %v472_v21 = vpop.permute.xlu1 %471 }
 0x172   :  { %v432_v28 = vpop.permute.xlu1 %431 }
 0x177   :  { %v448_v34 = vpop.permute.xlu1 %447 }
 0x17c   :  { %v496_v16 = vpop.permute.xlu1 %495 }
 0x180   :  { %v500_v41 = vpop.permute.xlu1 %499 }
 0x185   :  { %v480_v43 = vpop.permute.xlu1 %479 }
 0x18a   :  { %v524_v22 = vpop.permute.xlu1 %523 }
 0x18f   :  { %v504_v40 = vpop.permute.xlu1 %503 }
 0x193   :  { %v508_v3 = vpop.permute.xlu1 %507 }
 0x1a3   :  { %v811_v5 = vpop.f32.mrb[0].mxu0 }
 0x1a4   :  { %v284_v7 = vadd.f32 %v811_v5, %v193_v1  ;;  %v278_v9 = vpop.f32.mrb[1].mxu0  ;;  %v414_v5 = vmul.f32 %v1050_v31, %v397_v13 }
 0x1a5   :  { %v279_v52 = vadd.f32 %v278_v9, %v189_v0  ;;  %v528_v9 = vpop.permute.xlu0 %527 }
 0x1a6   :  { %v298_v53 = vmax.f32 %v284_v7, 0.0 }
 0x1a7   :  { %v297_v55 = vmax.f32 %v279_v52, 0.0  ;;  %v814_v56 = vpop.f32.mrb[2].mxu0 }
 0x1a8   :  { %v294_v57 = vadd.f32 %v814_v56, %v201_v54  ;;  %v288_v58 = vpop.f32.mrb[3].mxu0 }
 0x1a9   :  { %v289_v59 = vadd.f32 %v288_v58, %v197_v8  ;;  %v860_v10 = vpack.c.bf16 %v298_v53, %v297_v55  ;;  %v436_v55 = vadd.f32 %v428_v26, %v416_v51 }
 0x1aa   :  { %v300_v60 = vmax.f32 %v294_v57, 0.0 }
 0x1ab   :  { %v299_v61 = vmax.f32 %v289_v59, 0.0  ;;  %861 = vmatpush3.bf16.msra.mxu1 %v860_v10  ;;  %v434_v59 = vadd.f32 %v420_v14, %v414_v5 }
 0x1ac   :  { %862 = vmatprep.subr.bf16.mxu1 %v945_v38 }
 0x1ad   :  { %v863_v62 = vpack.c.bf16 %v300_v60, %v299_v61 }
 0x1af   :  { %864 = vmatpush3.bf16.msra.mxu1 %v863_v62 }
 0x1b0   :  { %873 = vmatprep.subr.bf16.mxu1 %v945_v38 }
 0x1b2   :  { %824 = vmatmul.mubr.msk.f32.vlgmr.msra.gmra.mrb[0].mxu1 %vm203_vm0, %v307_v63  ;;  %v536_v63 = vpop.permute.xlu1 %535 }
 0x1b3   :  { %848 = vmatprep.mubr.msk.f32.mxu1 %vm946_vm1, %v947_v45  ;;  %v417_v45 = vmul.f32 %v1050_v31, %v412_v37 }
 0x1b5   :  { %v437_v52 = vadd.f32 %v432_v28, %v417_v45 }
 0x285   :  { %v376_v46 = vpop.f32.mrb[0].mxu1 }
 0x286   :  { %v377_v47 = vadd.f32 %v376_v46, %v304_v12  ;;  %v825_v48 = vpop.f32.mrb[1].mxu1 }
 0x288   :  { %v386_v29 = vmul.f32 %v934_v50, %v377_v47 }
 0x28a   :  { %v1150_v49 = vadd.f32 %v386_v29, %v1041_v27  ;;  %v435_v27 = vadd.f32 %v424_v15, %v415_v32  ;;  %v532_v15 = vpop.permute.xlu0 %531 }
 0x28c   :  { %v457_v0 = vrot.slane %v1150_v49, %v89_v25  ;;  %v485_v1 = vrot.slane %v1150_v49, %v117_v30  ;;  %v513_v7 = vrot.slane %v1150_v49, %v145_v35  ;;  %v541_v25 = vrot.slane %v1150_v49, %v173_v39 }
 0x28e   :  { %v461_v53 = vmul.f32 %v457_v0, %v452_v44  ;;  %v459_v54 = vmul.f32 %v457_v0, %v444_v17  ;;  %v489_v56 = vmul.f32 %v485_v1, %v480_v43  ;;  %v487_v30 = vmul.f32 %v485_v1, %v472_v21 }
 0x28f   :  { %v460_v58 = vmul.f32 %v457_v0, %v448_v34  ;;  %v517_v10 = vmul.f32 %v513_v7, %v508_v3  ;;  %v515_v60 = vmul.f32 %v513_v7, %v500_v41  ;;  %v458_v61 = vmul.f32 %v457_v0, %v440_v19 }
 0x290   :  { %v465_v8 = vadd.f32 %v461_v53, %v437_v52  ;;  %v463_v57 = vadd.f32 %v459_v54, %v435_v27  ;;  %v488_v12 = vmul.f32 %v485_v1, %v476_v23  ;;  %v543_v13 = vmul.f32 %v541_v25, %v528_v9 }
 0x291   :  { %v464_v2 = vadd.f32 %v460_v58, %v436_v55  ;;  %v462_v17 = vadd.f32 %v458_v61, %v434_v59  ;;  %v486_v18 = vmul.f32 %v485_v1, %v468_v20  ;;  %v516_v33 = vmul.f32 %v513_v7, %v504_v40 }
 0x292   :  { %v493_v35 = vadd.f32 %v489_v56, %v465_v8  ;;  %v491_v62 = vadd.f32 %v487_v30, %v463_v57  ;;  %v545_v36 = vmul.f32 %v541_v25, %v536_v63  ;;  %v514_v34 = vmul.f32 %v513_v7, %v496_v16  ;;  %v556_v16 = vpop.permute.xlu0 %555 }
 0x293   :  { %v492_v39 = vadd.f32 %v488_v12, %v464_v2  ;;  %v490_v21 = vadd.f32 %v486_v18, %v462_v17  ;;  %v544_v41 = vmul.f32 %v541_v25, %v532_v15  ;;  %v542_v43 = vmul.f32 %v541_v25, %v524_v22  ;;  %v560_v22 = vpop.permute.xlu1 %559 }
 0x294   :  { %v521_v24 = vadd.f32 %v517_v10, %v493_v35  ;;  %v519_v28 = vadd.f32 %v515_v60, %v491_v62 }
 0x295   :  { %v520_v37 = vadd.f32 %v516_v33, %v492_v39  ;;  %v518_v42 = vadd.f32 %v514_v34, %v490_v21 }
 0x296   :  { %v547_v14 = vadd.f32 %v543_v13, %v519_v28  ;;  %v549_v26 = vadd.f32 %v545_v36, %v521_v24  ;;  %v568_v0 = vpop.permute.xlu0 %567 }
 0x297   :  { %v548_v19 = vadd.f32 %v544_v41, %v520_v37  ;;  %v546_v46 = vadd.f32 %v542_v43, %v518_v42  ;;  %v564_v5 = vpop.permute.xlu1 %563 }
 0x298   :  { %v551_v44 = vmax.f32 %v547_v14, 0.0  ;;  %v553_v47 = vmax.f32 %v549_v26, 0.0 }
 0x299   :  { %v552_v48 = vmax.f32 %v548_v19, 0.0  ;;  %v550_v50 = vmax.f32 %v546_v46, 0.0 }
 0x29a   :  { %v748_v54 = vpop.permute.xlu0 %747 }
 0x29b   :  { %v865_v20 = vpack.c.bf16 %v551_v44, %v550_v50  ;;  %v869_v23 = vpack.c.bf16 %v553_v47, %v552_v48  ;;  %v673_v53 = vpop.permute.xlu1 %672  ;;  %v750_v55 = vmul.f32 %v1050_v31, %v748_v54 }
 0x29d   :  { %866 = vmatprep.subr.bf16.mxu0 %v865_v20  ;;  %935 = vtanh.f32 %v750_v55 }
 0x29e   :  { %868 = vmatpush3.bf16.msra.mxu0 %v865_v20 }
 0x29f   :  { %870 = vmatprep.subr.bf16.mxu0 %v869_v23  ;;  %v670_v56 = vpop.permute.xlu1 %669 }
 0x2a2   :  { %872 = vmatpush3.bf16.msra.mxu0 %v869_v23 }
 0x2a5   :  { %835 = vmatmul.mubr.msk.f32.vlgmr.msra.gmra.mrb[4].mxu0 %vm203_vm0, %v1086_v4 }
 0x2a6   :  { %837 = vmatprep.mubr.msk.f32.mxu0 %vm203_vm0, %v1100_v11 }
 0x2a7   :  { %v936_v25 = vpop.eup %935 }
 0x2a9   :  { %838 = vmatmul.mubr.msk.f32.gmra.mrb[6].mxu0 %vm203_vm0, %v1093_v6 }
 0x378   :  { %v836_v40 = vpop.f32.mrb[4].mxu0 }
 0x379   :  { %v650_v29 = vadd.f32 %v836_v40, %v560_v22  ;;  %v644_v32 = vpop.f32.mrb[5].mxu0 }
 0x37a   :  { %v645_v45 = vadd.f32 %v644_v32, %v556_v16 }
 0x37b   :  { %v664_v51 = vmax.f32 %v650_v29, 0.0 }
 0x37c   :  { %v663_v3 = vmax.f32 %v645_v45, 0.0  ;;  %v839_v1 = vpop.f32.mrb[6].mxu0 }
 0x37d   :  { %v660_v7 = vadd.f32 %v839_v1, %v568_v0  ;;  %v654_v9 = vpop.f32.mrb[7].mxu0 }
 0x37e   :  { %v874_v4 = vpack.c.bf16 %v664_v51, %v663_v3  ;;  %v655_v27 = vadd.f32 %v654_v9, %v564_v5 }
 0x37f   :  { %v666_v52 = vmax.f32 %v660_v7, 0.0 }
 0x380   :  { %v665_v11 = vmax.f32 %v655_v27, 0.0  ;;  %875 = vmatpush3.bf16.msra.mxu1 %v874_v4 }
 0x381   :  { %876 = vmatprep.subr.bf16.mxu1 %v945_v38 }
 0x382   :  { %v877_v6 = vpack.c.bf16 %v666_v52, %v665_v11 }
 0x384   :  { %878 = vmatpush3.bf16.msra.mxu1 %v877_v6 }
 0x387   :  { %849 = vmatmul.mubr.msk.f32.vlgmr.msra.gmra.mrb[2].mxu1 %vm203_vm0, %v673_v53 }
 0x45a   :  { %v742_v8 = vpop.f32.mrb[2].mxu1 }
 0x45b   :  { %v743_v57 = vadd.f32 %v742_v8, %v670_v56  ;;  %v850_v30 = vpop.f32.mrb[3].mxu1 }
 0x45d   :  { %v752_v58 = vmul.f32 %v936_v25, %v743_v57 }
 0x45f   :  { %v753_v59 = vadd.f32 %v752_v58, %v1150_v49 }
 0x461   :  { %754 = vst [vmem:[%s1182_s3] sm:$0xf] %v753_v59 }

</bundles_post_ra>
